<compile_context>
chip_gen: v7x
topology: tpu7x:2x2x1
jax: 0.10.0
libtpu: 0.0.40
codegen_flags: <defaults>
</compile_context>

<pallas_src>
import jax
import jax.numpy as jnp
from jax.experimental import pallas as pl
from jax.experimental.pallas import tpu as pltpu


LANES = 128                    # vreg lane width (last dim of every block)
TARGET_BLOCK_BYTES = 1 << 20   # ~1 MiB per input block (HBM roofline knee)
TM_CAP = 8192                  # hard cap on rows per tile
NC = 2                         # leading chunks (lets v7x's 2 TCs split the stream)
SMALL_N = 65536                # below this, plain JAX beats any kernel launch


# ---------------------------------------------------------------------------
# Kernel
# ---------------------------------------------------------------------------
def _mse_partial_kernel(p_ref, g_ref, out_ref):
    """Fold one (1, tm, 128) tile of (p-g)^2 into a (1, 8, 128) f32 accumulator."""
    i = pl.program_id(1)  # reduction axis (last grid axis, "arbitrary")

    @pl.when(i == 0)
    def _init():
        out_ref[...] = jnp.zeros_like(out_ref)

    d = p_ref[...].astype(jnp.float32) - g_ref[...].astype(jnp.float32)
    sq = d * d
    tm = sq.shape[1]
    # (1, tm, 128) -> (tm//8, 8, 128) is a pure sublane regrouping (no relayout);
    # the axis-0 sum is vreg-wise VALU adds only (no XLU, no extra vld/vst).
    out_ref[...] += jnp.sum(sq.reshape(tm // 8, 8, LANES), axis=0)[None]


def _mse_partial_sums(p2, g2, tm, lead_sem):
    """p2/g2: (nc, ch_rows, LANES); returns (nc, 8, LANES) f32 partial sums."""
    nc, ch_rows, _ = p2.shape
    grid = (nc, ch_rows // tm)

    kernel_elems = p2.size
    itemsize = jnp.dtype(p2.dtype).itemsize
    cost = pl.CostEstimate(
        flops=3 * kernel_elems,                      # sub + mul + accumulate
        transcendentals=0,
        bytes_accessed=2 * kernel_elems * itemsize   # two input streams
        + nc * 8 * LANES * 4,                        # tiny partial-sum writeback
    )

    return pl.pallas_call(
        _mse_partial_kernel,
        out_shape=jax.ShapeDtypeStruct((nc, 8, LANES), jnp.float32),
        grid_spec=pltpu.PrefetchScalarGridSpec(
            num_scalar_prefetch=0,
            grid=grid,
            in_specs=[
                pl.BlockSpec((1, tm, LANES), lambda c, i: (c, i, 0)),
                pl.BlockSpec((1, tm, LANES), lambda c, i: (c, i, 0)),
            ],
            # Same output block across the reduction axis -> resident accumulator.
            out_specs=pl.BlockSpec((1, 8, LANES), lambda c, i: (c, 0, 0)),
        ),
        compiler_params=pltpu.CompilerParams(
            dimension_semantics=(lead_sem, pltpu.ARBITRARY),
        ),
        cost_estimate=cost,
    )(p2, g2)


# ---------------------------------------------------------------------------
# One-time probe: can the leading chunk axis be CORE_PARALLEL (v7x 2-TC split)?
# ---------------------------------------------------------------------------
_LEAD_SEM = None


def _leading_axis_semantics():
    global _LEAD_SEM
    if _LEAD_SEM is None:
        _LEAD_SEM = pltpu.PARALLEL
        try:
            ones = jnp.ones((NC, 16, LANES), jnp.float32)
            zeros = jnp.zeros((NC, 16, LANES), jnp.float32)
            out = _mse_partial_sums(ones, zeros, 8, pltpu.CORE_PARALLEL)
            out = jax.block_until_ready(out)
            # (1-0)^2 accumulated over 2 reduction steps -> exactly 2.0 everywhere.
            if bool(jnp.all(out == 2.0)):
                _LEAD_SEM = pltpu.CORE_PARALLEL
        except Exception:
            _LEAD_SEM = pltpu.PARALLEL
    return _LEAD_SEM


# ---------------------------------------------------------------------------
# Wrapper
# ---------------------------------------------------------------------------
def mse_loss(pred, gold):
    """Equivalent of torch.nn.functional.mse_loss(pred, gold) (mean reduction)."""
    assert pred.shape == gold.shape, "mse_loss expects matching shapes"
    n = pred.size
    if n == 0:
        raise ValueError("mse_loss: empty input (division by zero)")

    p = pred.reshape(-1)
    g = gold.reshape(-1)

    def _plain_jax():
        d = p.astype(jnp.float32) - g.astype(jnp.float32)
        return (jnp.sum(d * d) / jnp.float32(n)).astype(pred.dtype)

    # Small-input fast path: launch + per-step overhead dominates tiny inputs.
    if n < SMALL_N:
        return _plain_jax()

    # ---- static tiling decisions (Python ints, trace-time) -------------------
    itemsize = jnp.dtype(pred.dtype).itemsize
    tm_max = max(8, min(TM_CAP, (TARGET_BLOCK_BYTES // (LANES * itemsize)) // 8 * 8))

    rows = n // LANES                        # full 128-lane rows (>= 512 here)
    nc = NC
    ch_rows_total = rows // nc               # rows available per chunk
    steps = -(-ch_rows_total // tm_max)      # cdiv: reduction steps per chunk
    tm = (ch_rows_total // steps) // 8 * 8   # rows per tile, multiple of 8
    if tm == 0:                              # degenerate (guarded by SMALL_N)
        return _plain_jax()
    ch_rows = steps * tm                     # rows handled by the kernel per chunk
    kernel_elems = nc * ch_rows * LANES

    # ---- main body: Pallas kernel on the aligned prefix (no pad copies) ------
    p2 = p[:kernel_elems].reshape(nc, ch_rows, LANES)
    g2 = g[:kernel_elems].reshape(nc, ch_rows, LANES)
    partials = _mse_partial_sums(p2, g2, tm, _leading_axis_semantics())
    total = jnp.sum(partials)

    # ---- tail (a few rows per chunk + the <128-element lane tail) in JAX -----
    if kernel_elems < n:
        dt = p[kernel_elems:].astype(jnp.float32) - g[kernel_elems:].astype(jnp.float32)
        total = total + jnp.sum(dt * dt)

    return (total / jnp.float32(n)).astype(pred.dtype)


class MSELossPallas:
    """Mirror of the PyTorch MSELoss module (no parameters)."""

    def __init__(self, **kwargs):
        pass

    def __call__(self, pred, gold, raw=None, col_names=None):
        # raw / col_names are unused in the reference forward.
        return mse_loss(pred, gold)


if __name__ == "__main__":
    key = jax.random.PRNGKey(0)
    k1, k2 = jax.random.split(key)

    # KDD WDF-2022 day-seq style shapes: batch=2, 288 timesteps, 134 turbines.
    B, T, N_TURB = 2, 288, 134
    pred = jax.random.normal(k1, (B, T, N_TURB), dtype=jnp.float32)
    gold = jax.random.normal(k2, (B, T, N_TURB), dtype=jnp.float32)

    loss_fn = MSELossPallas()
    out = loss_fn(pred, gold, raw=None, col_names=None)
    out = jax.block_until_ready(out)

    # Sanity check against plain-JAX reference.
    ref = jnp.mean((pred.astype(jnp.float32) - gold.astype(jnp.float32)) ** 2)
    assert jnp.allclose(out, ref, rtol=1e-4, atol=1e-6), (out, ref)

    print("KERNEL_OK")
</pallas_src>

<mosaic_0001>
module attributes {stable_mosaic.version = 11 : i64} {
  func.func @_mse_partial_kernel(%arg0: i32, %arg1: i32, %arg2: memref<1x8x128xf32, #tpu.memory_space<vmem>>, %arg3: memref<1x8x128xf32, #tpu.memory_space<vmem>>, %arg4: memref<1x8x128xf32, #tpu.memory_space<vmem>>) attributes {dimension_semantics = [#tpu.dimension_semantics<core_parallel>, #tpu.dimension_semantics<arbitrary>], iteration_bounds = array<i64: 2, 2>, scalar_prefetch = 0 : i64, scratch_operands = 0 : i64, tpu.core_type = #tpu.core_type<tc>, window_params = [{transform_indices = @transform_0, window_bounds = array<i64: 1, 8, 128>}, {transform_indices = @transform_1, window_bounds = array<i64: 1, 8, 128>}, {transform_indices = @transform_2, window_bounds = array<i64: 1, 8, 128>}]} {
    %c0_i32 = arith.constant 0 : i32
    %0 = arith.cmpi eq, %arg1, %c0_i32 : i32
    %1 = arith.extui %0 : i1 to i32
    %c0_i32_0 = arith.constant 0 : i32
    %2 = arith.cmpi ne, %1, %c0_i32_0 : i32
    scf.if %2 {
      %cst_12 = arith.constant 0.000000e+00 : f32
      %12 = vector.broadcast %cst_12 : f32 to vector<1x8x128xf32>
      %c0_13 = arith.constant 0 : index
      %c0_14 = arith.constant 0 : index
      %c0_15 = arith.constant 0 : index
      %13 = vector.load %arg4[%c0_13, %c0_14, %c0_15] : memref<1x8x128xf32, #tpu.memory_space<vmem>>, vector<1x8x128xf32>
      tpu.vector_store %arg4[%c0_13, %c0_14, %c0_15], %12 {strides = array<i32>} : memref<1x8x128xf32, #tpu.memory_space<vmem>>, vector<1x8x128xf32>,
    } else {
    }
    %c0 = arith.constant 0 : index
    %c0_1 = arith.constant 0 : index
    %c0_2 = arith.constant 0 : index
    %3 = vector.load %arg2[%c0, %c0_1, %c0_2] : memref<1x8x128xf32, #tpu.memory_space<vmem>>, vector<1x8x128xf32>
    %c0_3 = arith.constant 0 : index
    %c0_4 = arith.constant 0 : index
    %c0_5 = arith.constant 0 : index
    %4 = vector.load %arg3[%c0_3, %c0_4, %c0_5] : memref<1x8x128xf32, #tpu.memory_space<vmem>>, vector<1x8x128xf32>
    %5 = arith.subf %3, %4 : vector<1x8x128xf32>
    %6 = arith.mulf %5, %5 : vector<1x8x128xf32>
    %c0_6 = arith.constant 0 : index
    %c0_7 = arith.constant 0 : index
    %c0_8 = arith.constant 0 : index
    %7 = vector.load %arg4[%c0_6, %c0_7, %c0_8] : memref<1x8x128xf32, #tpu.memory_space<vmem>>, vector<1x8x128xf32>
    %cst = arith.constant dense<0.000000e+00> : vector<8x128xf32>
    %8 = vector.multi_reduction <add>, %6, %cst [0] : vector<1x8x128xf32> to vector<8x128xf32>
    %9 = vector.shape_cast %8 : vector<8x128xf32> to vector<1x8x128xf32>
    %10 = arith.addf %7, %9 : vector<1x8x128xf32>
    %c0_9 = arith.constant 0 : index
    %c0_10 = arith.constant 0 : index
    %c0_11 = arith.constant 0 : index
    %11 = vector.load %arg4[%c0_9, %c0_10, %c0_11] : memref<1x8x128xf32, #tpu.memory_space<vmem>>, vector<1x8x128xf32>
    tpu.vector_store %arg4[%c0_9, %c0_10, %c0_11], %10 {strides = array<i32>} : memref<1x8x128xf32, #tpu.memory_space<vmem>>, vector<1x8x128xf32>,
    return
  }
  func.func @transform_0(%arg0: i32, %arg1: i32) -> (i32, i32, i32) {
    %c0_i32 = arith.constant 0 : i32
    %c0_i32_0 = arith.constant 0 : i32
    return %arg0, %arg1, %c0_i32 : i32, i32, i32
  }
  func.func @transform_1(%arg0: i32, %arg1: i32) -> (i32, i32, i32) {
    %c0_i32 = arith.constant 0 : i32
    %c0_i32_0 = arith.constant 0 : i32
    return %arg0, %arg1, %c0_i32 : i32, i32, i32
  }
  func.func @transform_2(%arg0: i32, %arg1: i32) -> (i32, i32, i32) {
    %c0_i32 = arith.constant 0 : i32
    %c0_i32_0 = arith.constant 0 : i32
    %c0_i32_1 = arith.constant 0 : i32
    return %arg0, %c0_i32, %c0_i32_0 : i32, i32, i32
  }
}

module attributes {stable_mosaic.version = 11 : i64} {
  func.func @_mse_partial_kernel(%arg0: i32, %arg1: i32, %arg2: memref<1x296x128xf32, #tpu.memory_space<vmem>>, %arg3: memref<1x296x128xf32, #tpu.memory_space<vmem>>, %arg4: memref<1x8x128xf32, #tpu.memory_space<vmem>>) attributes {dimension_semantics = [#tpu.dimension_semantics<parallel>, #tpu.dimension_semantics<arbitrary>], iteration_bounds = array<i64: 2, 1>, scalar_prefetch = 0 : i64, scratch_operands = 0 : i64, tpu.core_type = #tpu.core_type<tc>, window_params = [{transform_indices = @transform_0, window_bounds = array<i64: 1, 296, 128>}, {transform_indices = @transform_1, window_bounds = array<i64: 1, 296, 128>}, {transform_indices = @transform_2, window_bounds = array<i64: 1, 8, 128>}]} {
    %c0_i32 = arith.constant 0 : i32
    %0 = arith.cmpi eq, %arg1, %c0_i32 : i32
    %1 = arith.extui %0 : i1 to i32
    %c0_i32_0 = arith.constant 0 : i32
    %2 = arith.cmpi ne, %1, %c0_i32_0 : i32
    scf.if %2 {
      %cst_12 = arith.constant 0.000000e+00 : f32
      %13 = vector.broadcast %cst_12 : f32 to vector<1x8x128xf32>
      %c0_13 = arith.constant 0 : index
      %c0_14 = arith.constant 0 : index
      %c0_15 = arith.constant 0 : index
      %14 = vector.load %arg4[%c0_13, %c0_14, %c0_15] : memref<1x8x128xf32, #tpu.memory_space<vmem>>, vector<1x8x128xf32>
      tpu.vector_store %arg4[%c0_13, %c0_14, %c0_15], %13 {strides = array<i32>} : memref<1x8x128xf32, #tpu.memory_space<vmem>>, vector<1x8x128xf32>,
    } else {
    }
    %c0 = arith.constant 0 : index
    %c0_1 = arith.constant 0 : index
    %c0_2 = arith.constant 0 : index
    %3 = vector.load %arg2[%c0, %c0_1, %c0_2] : memref<1x296x128xf32, #tpu.memory_space<vmem>>, vector<1x296x128xf32>
    %c0_3 = arith.constant 0 : index
    %c0_4 = arith.constant 0 : index
    %c0_5 = arith.constant 0 : index
    %4 = vector.load %arg3[%c0_3, %c0_4, %c0_5] : memref<1x296x128xf32, #tpu.memory_space<vmem>>, vector<1x296x128xf32>
    %5 = arith.subf %3, %4 : vector<1x296x128xf32>
    %6 = arith.mulf %5, %5 : vector<1x296x128xf32>
    %c0_6 = arith.constant 0 : index
    %c0_7 = arith.constant 0 : index
    %c0_8 = arith.constant 0 : index
    %7 = vector.load %arg4[%c0_6, %c0_7, %c0_8] : memref<1x8x128xf32, #tpu.memory_space<vmem>>, vector<1x8x128xf32>
    %8 = vector.shape_cast %6 : vector<1x296x128xf32> to vector<37x8x128xf32>
    %cst = arith.constant dense<0.000000e+00> : vector<8x128xf32>
    %9 = vector.multi_reduction <add>, %8, %cst [0] : vector<37x8x128xf32> to vector<8x128xf32>
    %10 = vector.shape_cast %9 : vector<8x128xf32> to vector<1x8x128xf32>
    %11 = arith.addf %7, %10 : vector<1x8x128xf32>
    %c0_9 = arith.constant 0 : index
    %c0_10 = arith.constant 0 : index
    %c0_11 = arith.constant 0 : index
    %12 = vector.load %arg4[%c0_9, %c0_10, %c0_11] : memref<1x8x128xf32, #tpu.memory_space<vmem>>, vector<1x8x128xf32>
    tpu.vector_store %arg4[%c0_9, %c0_10, %c0_11], %11 {strides = array<i32>} : memref<1x8x128xf32, #tpu.memory_space<vmem>>, vector<1x8x128xf32>,
    return
  }
  func.func @transform_0(%arg0: i32, %arg1: i32) -> (i32, i32, i32) {
    %c0_i32 = arith.constant 0 : i32
    %c0_i32_0 = arith.constant 0 : i32
    return %arg0, %arg1, %c0_i32 : i32, i32, i32
  }
  func.func @transform_1(%arg0: i32, %arg1: i32) -> (i32, i32, i32) {
    %c0_i32 = arith.constant 0 : i32
    %c0_i32_0 = arith.constant 0 : i32
    return %arg0, %arg1, %c0_i32 : i32, i32, i32
  }
  func.func @transform_2(%arg0: i32, %arg1: i32) -> (i32, i32, i32) {
    %c0_i32 = arith.constant 0 : i32
    %c0_i32_0 = arith.constant 0 : i32
    %c0_i32_1 = arith.constant 0 : i32
    return %arg0, %c0_i32, %c0_i32_0 : i32, i32, i32
  }
}

</mosaic_0001>

<bundles_post_ra>
// kernel: tpu_custom_call.1
= control target key start
LH: loop header
LB: loop body
LE: loop exit
PB: predicated region body
PF: predicated region fallthrough
CT: control target
= control target key end

     0   :  { %7 = vsyncpa [#allocation3], 0  ;;  %s1105_s0 = inlined_call_operand.hbm [shape: f32[2,296,128], index: 0, kind: input, shape index: {}]   ;;  %s1106_s1 = inlined_call_operand.hbm [shape: f32[2,296,128], index: 1, kind: input, shape index: {}]   ;;  %s1107_s2 = inlined_call_operand.hbm [shape: f32[2,8,128], index: 2, kind: output, shape index: {}]  }
   0x1   :  { %9 = vsyncpa [#allocation3 + $0x1], 0 }
   0x2   :  { %10 = vsyncpa [#allocation6], 0 }
   0x3   :  { %12 = vsyncpa [#allocation6 + $0x1], 0 }
   0x4   :  { %13 = vsyncpa [#allocation4], 0 }
   0x5   :  { %15 = vsyncpa [#allocation4 + $0x1], 0  ;;  %s792_s9 = smov 0   ;;  %s794_s10 = smov 0  }
   0x6   :  { %s796_s11 = smov 0   ;;  %s798_s12 = smov 0  }
   0x7   :  { %s800_s13 = smov 0   ;;  %s802_s14 = smov 0  }
   0x8 LB: > { %s537_s15 = sadd.s32 4294967295, %s770_s14   ;;  %s538_s16 = sadd.s32 4294967294, %s770_s14   ;;  %s770_s14 = sphi %s802_s14, %s21_s14   ;;  %s766_s13 = sphi %s800_s13, %s1125_s13   ;;  %s762_s12 = sphi %s798_s12, %s1124_s12   ;;  %s758_s11 = sphi %s796_s11, %s1123_s11   ;;  %s754_s10 = sphi %s794_s10, %s1122_s10   ;;  %s750_s9 = sphi %s792_s9, %s1121_s9  }
   0x9   : > { %s33_s17 = sadd.s32 1, %s766_s13  ;;  %s42_s18 = sadd.s32 1, %s758_s11 }
   0xa   : > { %p35_p0 = scmp.ge.s32.totalorder %s33_s17, 2  ;;  %p49_p1 = scmp.ne.s32.totalorder %s758_s11, %s754_s10 }
   0xb   : > { %p50_p2 = scmp.eq.s32.totalorder %s770_s14, 0  ;;  %p55_p3 = scmp.ne.s32.totalorder %s754_s10, %s750_s9 }
   0xc   : > { %s1127_s17 = smov (%p35_p0, %s33_s17), 0  ;;  %p56_p5 = scmp.eq.s32.totalorder %s537_s15, 0 }
   0xd   : > { %p833_p4 = por %p50_p2, %p49_p1  ;;  %s37_s20 = ssub.s32 %s766_s13, %s1127_s17 }
   0xe   : > { %p107_p6 = scmp.eq.s32.totalorder %s537_s15, 1  ;;  %p40_p7 = scmp.eq.s32.totalorder %s37_s20, 0 }
   0xf   : > { %p839_p8 = por %p56_p5, %p55_p3  ;;  %p113_p10 = scmp.eq.s32.totalorder %s538_s16, 1 }
  0x10   : > { %p843_p9 = por %p107_p6, %p49_p1  ;;  %p571_p13 = scmp.lt.s32.totalorder %s770_s14, 2 }
  0x11   : > { %s1111_s21 = scalar_select %p839_p8, 1, 0 }
  0x12   : > { %s1112_s22 = scalar_select %p843_p9, 1, 0 }
  0x13   : > { %s848_s23 = scalar_select %p40_p7, %s758_s11, %s42_s18  }
  0x14   : > { %p850_p11 = por %p113_p10, %p55_p3  ;;  %s857_s25 = sand.u32 1, %s758_s11  }
  0x15   : > { %s549_s26 = smul.u32 296, %s857_s25  ;;  %p863_p0 = pnand %p571_p13, %p833_p4 }
  0x16   : > { %s1113_s24 = scalar_select %p850_p11, 1, 0 }
  0x17   : > { %s550_s27 = smul.u32 4736, %s766_s13  ;;  %s137_s4 = scalar_lea.vmem [#allocation2], %s549_s26 }
  0x18   : > { %s146_s5 = sshll.u32 %s137_s4, 4  ;;  %s134_s6 = scalar_lea.sflag [#allocation3], %s857_s25  ;;  %s876_s5 = int_to_ptr.vmem [resolvable:$true] %s146_s5 }
  0x19   : > { %s872_s3 = scalar_lea.hbm %s1105_s0, %s550_s27  ;;  %p626_p3 = pneg %p863_p0 }
  0x1a   : > { %s624_s7 = scalar_lea.hbm %s872_s3, 4736  ;;  %s629_s16 = scalar_lea.hbm %s1105_s0, 9472 }
  0x1b   : > { %p625_p2 = scmp.ne.s32.totalorder %s872_s3, %s624_s7  ;;  %p630_p6 = scmp.lt.u32.totalorder %s872_s3, %s1105_s0 }
  0x1c   : > { %p631_p7 = scmp.lt.u32.totalorder %s629_s16, %s624_s7  ;;  %p633_p13 = scmp.lt.u32.totalorder %s624_s7, %s872_s3 }
  0x1d   : > { %p627_p4 = pnand %p626_p3, %p625_p2 }
  0x1e   : > { %p632_p10 = por %p631_p7, %p630_p6 }
  0x1f   : > { %p628_p5 = pneg %p627_p4 }
  0x20   : > { %p634_p12 = por %p633_p13, %p632_p10 }
  0x22   : > { %p635_p1 = pnand %p634_p12, %p628_p5 }
  0x24   : > { %638 = shalt.err (!%p635_p1)
}
  0x25   : > { %s639_s20 = scalar_lea.vmem %s876_s5, 4736  ;;  %s772_s29 = smov [#allocation2]  }
  0x26   : > { %p640_p2 = scmp.ne.s32.totalorder %s876_s5, %s639_s20  ;;  %s644_s30 = sshll.u32 %s772_s29, 4  ;;  %s645_s30 = int_to_ptr.vmem [resolvable:$false] %s644_s30 }
  0x27   : > { %s646_s4 = scalar_lea.vmem %s645_s30, 9472  ;;  %p647_p9 = scmp.lt.s32.totalorder %s876_s5, %s645_s30 }
  0x28   : > { %p642_p4 = pnand %p640_p2, %p626_p3  ;;  %p648_p6 = scmp.lt.s32.totalorder %s646_s4, %s639_s20 }
  0x2a   : > { %p643_p11 = pneg %p642_p4  ;;  %p649_p7 = por %p648_p6, %p647_p9 }
  0x2c   : > { %p650_p10 = pnand %p649_p7, %p643_p11 }
  0x2e   : > { %653 = shalt.err (!%p650_p10)
}
  0x2f   : > { %s773_s7 = smov 128   ;;  %s774_s8 = smov 8  }
  0x30   : > { %563 = dma.hbm_to_vmem [thread:$0]  (!%p863_p0), %s872_s3, 4736, %s876_s5, %s134_s6, %s773_s7, %s773_s7, %s774_s8  }
  0x31   : > { %p177_p9 = scmp.lt.s32.totalorder %s770_s14, 3  ;;  %s916_s18 = scalar_lea.hbm %s1106_s1, %s550_s27 }
  0x32   : > { %p1115_p11 = scmp.ge.s32.totalorder %s770_s14, 1  ;;  %s160_s20 = scalar_lea.vmem [#allocation5], %s549_s26 }
  0x33   : > { %s169_s29 = sshll.u32 %s160_s20, 4  ;;  %s157_s3 = scalar_lea.sflag [#allocation6], %s857_s25  ;;  %s926_s29 = int_to_ptr.vmem [resolvable:$true] %s169_s29 }
  0x34   : > { %p920_p12 = pnand %p1115_p11, %p177_p9  ;;  %s654_s5 = scalar_lea.hbm %s916_s18, 4736 }
  0x35   : > { %p655_p1 = scmp.ne.s32.totalorder %s916_s18, %s654_s5  ;;  %s659_s30 = scalar_lea.hbm %s1106_s1, 9472 }
  0x36   : > { %p660_p2 = scmp.lt.u32.totalorder %s916_s18, %s1106_s1  ;;  %p661_p4 = scmp.lt.u32.totalorder %s659_s30, %s654_s5 }
  0x37   : > { %p657_p5 = pnand %p655_p1, %p626_p3  ;;  %p663_p7 = scmp.lt.u32.totalorder %s654_s5, %s916_s18 }
  0x38   : > { %p662_p6 = por %p661_p4, %p660_p2 }
  0x39   : > { %p658_p13 = pneg %p657_p5 }
  0x3a   : > { %p664_p10 = por %p663_p7, %p662_p6 }
  0x3c   : > { %p665_p9 = pnand %p664_p10, %p658_p13 }
  0x3e   : > { %668 = shalt.err (!%p665_p9)
}
  0x3f   : > { %s669_s26 = scalar_lea.vmem %s926_s29, 4736  ;;  %s775_s16 = smov [#allocation5]  }
  0x40   : > { %p670_p11 = scmp.ne.s32.totalorder %s926_s29, %s669_s26  ;;  %s674_s20 = sshll.u32 %s775_s16, 4  ;;  %s675_s20 = int_to_ptr.vmem [resolvable:$false] %s674_s20 }
  0x41   : > { %s676_s27 = scalar_lea.vmem %s675_s20, 9472  ;;  %p677_p8 = scmp.lt.s32.totalorder %s926_s29, %s675_s20 }
  0x42   : > { %p672_p1 = pnand %p670_p11, %p626_p3  ;;  %p678_p2 = scmp.lt.s32.totalorder %s676_s27, %s669_s26 }
  0x44   : > { %p673_p5 = pneg %p672_p1  ;;  %p679_p4 = por %p678_p2, %p677_p8 }
  0x46   : > { %p680_p6 = pnand %p679_p4, %p673_p5 }
  0x48   : > { %683 = shalt.err (!%p680_p6)
}
  0x49   : > { %566 = dma.hbm_to_vmem [thread:$0]  (!%p863_p0), %s916_s18, 4736, %s926_s29, %s157_s3, %s773_s7, %s773_s7, %s774_s8  }
  0x4a   : > { %181 = sbr.rel (%p920_p12) target bundleno = 176 (0xb0), region = 28  ;;  %s960_s5 = sand.u32 (!%p920_p12), 1, %s754_s10  }
  0x4b   : > { %s553_s6 = smul.u32 (!%p920_p12), 296, %s960_s5  ;;  %s184_s30 = scalar_lea.sflag (!%p920_p12), [#allocation3], %s960_s5 }
  0x4c   : > { %p1117_p8 = scmp.ne.s32.totalorder (!%p920_p12), %s1111_s21, 0 }
  0x4d   : > { %s964_s28 = scalar_lea.vmem (!%p920_p12), [#allocation2], %s553_s6 }
  0x51   : > { %737 = dma.done.wait (%p1117_p8), %s184_s30, 4736  }
  0x52   : > { %739 = vsyncadd (%p1117_p8), %s184_s30, 4294962560  ;;  %s193_s25 = scalar_lea.sflag [#allocation6], %s960_s5  ;;  %s971_s7 = scalar_lea.vmem [#allocation5], %s553_s6 }
  0x53   : > { %741 = dma.done.wait (%p1117_p8), %s193_s25, 4736  }
  0x54   : > { %743 = vsyncadd (%p1117_p8), %s193_s25, 4294962560  ;;  %v229_v0 = vld [vmem:[%s964_s28] sm:$0xff]  ;;  %v230_v1 = vld [vmem:[%s964_s28 + $0x8] sm:$0xff]  ;;  %s544_s21 = sshll.u32 %s960_s5, 3  ;;  %s546_s8 = sshll.u32 %s762_s12, 7 }
  0x55   : > { %v266_v2 = vld [vmem:[%s971_s7] sm:$0xff]  ;;  %v267_v3 = vld [vmem:[%s971_s7 + $0x8] sm:$0xff]  ;;  %v268_v5 = vld [vmem:[%s971_s7 + $0x10] sm:$0xff]  ;;  %s221_s18 = scalar_lea.vmem [#allocation7], %s544_s21  ;;  %s1056_s4 = scalar_lea.hbm %s1107_s2, %s546_s8 }
  0x56   : > { %v231_v4 = vld [vmem:[%s964_s28 + $0x10] sm:$0xff]  ;;  %v303_v6 = vsub.f32 %v229_v0, %v266_v2  ;;  %v304_v7 = vsub.f32 %v230_v1, %v267_v3  ;;  %v232_v8 = vld [vmem:[%s964_s28 + $0x18] sm:$0xff]  ;;  %v269_v9 = vld [vmem:[%s971_s7 + $0x18] sm:$0xff]  ;;  %s430_s19 = sshll.u32 %s221_s18, 4  ;;  %s417_s15 = scalar_lea.sflag [#allocation4], %s960_s5  ;;  %s1058_s19 = int_to_ptr.vmem [resolvable:$true] %s430_s19 }
  0x57   : > { %v305_v10 = vsub.f32 %v231_v4, %v268_v5  ;;  %v233_v11 = vld [vmem:[%s964_s28 + $0x20] sm:$0xff]  ;;  %v270_v12 = vld [vmem:[%s971_s7 + $0x20] sm:$0xff]  ;;  %v306_v13 = vsub.f32 %v232_v8, %v269_v9  ;;  %v234_v16 = vld [vmem:[%s964_s28 + $0x28] sm:$0xff]  ;;  %s684_s26 = scalar_lea.vmem %s1058_s19, 128  ;;  %p1118_p3 = scmp.ne.s32.totalorder %s1112_s22, 0 }
  0x58   : > { %v340_v14 = vmul.f32 %v303_v6, %v303_v6  ;;  %v341_v15 = vmul.f32 %v304_v7, %v304_v7  ;;  %v271_v17 = vld [vmem:[%s971_s7 + $0x28] sm:$0xff]  ;;  %v307_v18 = vsub.f32 %v233_v11, %v270_v12  ;;  %v235_v20 = vld [vmem:[%s964_s28 + $0x30] sm:$0xff]  ;;  %v272_v21 = vld [vmem:[%s971_s7 + $0x30] sm:$0xff]  ;;  %p685_p0 = scmp.ne.s32.totalorder %s1058_s19, %s684_s26  ;;  %s776_s12 = smov [#allocation7]  }
  0x59   : > { %v342_v19 = vmul.f32 %v305_v10, %v305_v10  ;;  %v308_v22 = vsub.f32 %v234_v16, %v271_v17  ;;  %v343_v23 = vmul.f32 %v306_v13, %v306_v13  ;;  %v236_v25 = vld [vmem:[%s964_s28 + $0x38] sm:$0xff]  ;;  %v273_v26 = vld [vmem:[%s971_s7 + $0x38] sm:$0xff]  ;;  %v309_v27 = vsub.f32 %v235_v20, %v272_v21  ;;  %v237_v30 = vld [vmem:[%s964_s28 + $0x40] sm:$0xff]  ;;  %s688_s16 = sshll.u32 %s776_s12, 4  ;;  %s689_s16 = int_to_ptr.vmem [resolvable:$false] %s688_s16 }
  0x5a   : > { %v378_v24 = vadd.f32 %v341_v15, %v340_v14  ;;  %v344_v28 = vmul.f32 %v307_v18, %v307_v18  ;;  %v274_v31 = vld [vmem:[%s971_s7 + $0x40] sm:$0xff]  ;;  %v310_v32 = vsub.f32 %v236_v25, %v273_v26  ;;  %v238_v35 = vld [vmem:[%s964_s28 + $0x48] sm:$0xff]  ;;  %v275_v36 = vld [vmem:[%s971_s7 + $0x48] sm:$0xff]  ;;  %p686_p12 = pnand %p685_p0, %p1118_p3  ;;  %s690_s20 = scalar_lea.vmem %s689_s16, 256 }
  0x5b   : > { %v345_v33 = vmul.f32 %v308_v22, %v308_v22  ;;  %v311_v37 = vsub.f32 %v237_v30, %v274_v31  ;;  %v346_v38 = vmul.f32 %v309_v27, %v309_v27  ;;  %v239_v40 = vld [vmem:[%s964_s28 + $0x50] sm:$0xff]  ;;  %v276_v41 = vld [vmem:[%s971_s7 + $0x50] sm:$0xff]  ;;  %v312_v42 = vsub.f32 %v238_v35, %v275_v36  ;;  %v240_v45 = vld [vmem:[%s964_s28 + $0x58] sm:$0xff]  ;;  %p691_p7 = scmp.lt.s32.totalorder %s1058_s19, %s689_s16  ;;  %p692_p10 = scmp.lt.s32.totalorder %s690_s20, %s684_s26 }
  0x5c   : > { %v379_v29 = vadd.f32 %v378_v24, %v342_v19  ;;  %v347_v43 = vmul.f32 %v310_v32, %v310_v32  ;;  %v277_v46 = vld [vmem:[%s971_s7 + $0x58] sm:$0xff]  ;;  %v313_v47 = vsub.f32 %v239_v40, %v276_v41  ;;  %v241_v50 = vld [vmem:[%s964_s28 + $0x60] sm:$0xff]  ;;  %v278_v51 = vld [vmem:[%s971_s7 + $0x60] sm:$0xff]  ;;  %p687_p13 = pneg %p686_p12 }
  0x5d   : > { %v348_v48 = vmul.f32 %v311_v37, %v311_v37  ;;  %v314_v52 = vsub.f32 %v240_v45, %v277_v46  ;;  %v349_v53 = vmul.f32 %v312_v42, %v312_v42  ;;  %v242_v55 = vld [vmem:[%s964_s28 + $0x68] sm:$0xff]  ;;  %v279_v56 = vld [vmem:[%s971_s7 + $0x68] sm:$0xff]  ;;  %v315_v57 = vsub.f32 %v241_v50, %v278_v51  ;;  %v243_v60 = vld [vmem:[%s964_s28 + $0x70] sm:$0xff]  ;;  %p693_p9 = por %p692_p10, %p691_p7 }
  0x5e   : > { %v380_v34 = vadd.f32 %v379_v29, %v343_v23  ;;  %v350_v58 = vmul.f32 %v313_v47, %v313_v47  ;;  %v280_v61 = vld [vmem:[%s971_s7 + $0x70] sm:$0xff]  ;;  %v316_v62 = vsub.f32 %v242_v55, %v279_v56  ;;  %v244_v1 = vld [vmem:[%s964_s28 + $0x78] sm:$0xff]  ;;  %v281_v2 = vld [vmem:[%s971_s7 + $0x78] sm:$0xff] }
  0x5f   : > { %v351_v63 = vmul.f32 %v314_v52, %v314_v52  ;;  %v317_v3 = vsub.f32 %v243_v60, %v280_v61  ;;  %v352_v4 = vmul.f32 %v315_v57, %v315_v57  ;;  %v245_v6 = vld [vmem:[%s964_s28 + $0x80] sm:$0xff]  ;;  %v282_v7 = vld [vmem:[%s971_s7 + $0x80] sm:$0xff]  ;;  %v318_v8 = vsub.f32 %v244_v1, %v281_v2  ;;  %v246_v11 = vld [vmem:[%s964_s28 + $0x88] sm:$0xff]  ;;  %p694_p11 = pnand %p693_p9, %p687_p13 }
  0x60   : > { %v381_v39 = vadd.f32 %v380_v34, %v344_v28  ;;  %v353_v9 = vmul.f32 %v316_v62, %v316_v62  ;;  %v283_v12 = vld [vmem:[%s971_s7 + $0x88] sm:$0xff]  ;;  %v319_v13 = vsub.f32 %v245_v6, %v282_v7  ;;  %v247_v16 = vld [vmem:[%s964_s28 + $0x90] sm:$0xff]  ;;  %v284_v17 = vld [vmem:[%s971_s7 + $0x90] sm:$0xff] }
  0x61   : > { %v354_v14 = vmul.f32 %v317_v3, %v317_v3  ;;  %v320_v18 = vsub.f32 %v246_v11, %v283_v12  ;;  %v355_v19 = vmul.f32 %v318_v8, %v318_v8  ;;  %v248_v21 = vld [vmem:[%s964_s28 + $0x98] sm:$0xff]  ;;  %v285_v22 = vld [vmem:[%s971_s7 + $0x98] sm:$0xff]  ;;  %v321_v23 = vsub.f32 %v247_v16, %v284_v17  ;;  %v249_v26 = vld [vmem:[%s964_s28 + $0xa0] sm:$0xff] }
  0x62   : > { %v382_v44 = vadd.f32 %v381_v39, %v345_v33  ;;  %v356_v24 = vmul.f32 %v319_v13, %v319_v13  ;;  %v286_v27 = vld [vmem:[%s971_s7 + $0xa0] sm:$0xff]  ;;  %v322_v28 = vsub.f32 %v248_v21, %v285_v22  ;;  %v250_v31 = vld [vmem:[%s964_s28 + $0xa8] sm:$0xff]  ;;  %v287_v32 = vld [vmem:[%s971_s7 + $0xa8] sm:$0xff] }
  0x63   : > { %v357_v29 = vmul.f32 %v320_v18, %v320_v18  ;;  %v323_v33 = vsub.f32 %v249_v26, %v286_v27  ;;  %v358_v34 = vmul.f32 %v321_v23, %v321_v23  ;;  %v251_v36 = vld [vmem:[%s964_s28 + $0xb0] sm:$0xff]  ;;  %v288_v37 = vld [vmem:[%s971_s7 + $0xb0] sm:$0xff]  ;;  %v252_v41 = vld [vmem:[%s964_s28 + $0xb8] sm:$0xff] }
  0x64   : > { %v383_v49 = vadd.f32 %v382_v44, %v346_v38  ;;  %v324_v38 = vsub.f32 %v250_v31, %v287_v32  ;;  %v359_v39 = vmul.f32 %v322_v28, %v322_v28  ;;  %v289_v42 = vld [vmem:[%s971_s7 + $0xb8] sm:$0xff]  ;;  %v253_v46 = vld [vmem:[%s964_s28 + $0xc0] sm:$0xff]  ;;  %v290_v47 = vld [vmem:[%s971_s7 + $0xc0] sm:$0xff] }
  0x65   : > { %v360_v44 = vmul.f32 %v323_v33, %v323_v33  ;;  %v254_v51 = vld [vmem:[%s964_s28 + $0xc8] sm:$0xff]  ;;  %v291_v52 = vld [vmem:[%s971_s7 + $0xc8] sm:$0xff]  ;;  %v255_v56 = vld [vmem:[%s964_s28 + $0xd0] sm:$0xff] }
  0x66   : > { %v384_v54 = vadd.f32 %v383_v49, %v347_v43  ;;  %v325_v43 = vsub.f32 %v251_v36, %v288_v37  ;;  %v361_v49 = vmul.f32 %v324_v38, %v324_v38  ;;  %v292_v57 = vld [vmem:[%s971_s7 + $0xd0] sm:$0xff]  ;;  %v256_v61 = vld [vmem:[%s964_s28 + $0xd8] sm:$0xff]  ;;  %v293_v62 = vld [vmem:[%s971_s7 + $0xd8] sm:$0xff] }
  0x67   : > { %v257_v2 = vld [vmem:[%s964_s28 + $0xe0] sm:$0xff]  ;;  %v294_v3 = vld [vmem:[%s971_s7 + $0xe0] sm:$0xff]  ;;  %v258_v7 = vld [vmem:[%s964_s28 + $0xe8] sm:$0xff] }
  0x68   : > { %v385_v59 = vadd.f32 %v384_v54, %v348_v48  ;;  %v326_v48 = vsub.f32 %v252_v41, %v289_v42  ;;  %v362_v54 = vmul.f32 %v325_v43, %v325_v43  ;;  %v295_v8 = vld [vmem:[%s971_s7 + $0xe8] sm:$0xff]  ;;  %v259_v12 = vld [vmem:[%s964_s28 + $0xf0] sm:$0xff]  ;;  %v296_v13 = vld [vmem:[%s971_s7 + $0xf0] sm:$0xff] }
  0x69   : > { %v260_v17 = vld [vmem:[%s964_s28 + $0xf8] sm:$0xff]  ;;  %v297_v18 = vld [vmem:[%s971_s7 + $0xf8] sm:$0xff]  ;;  %v261_v22 = vld [vmem:[%s964_s28 + $0x100] sm:$0xff] }
  0x6a   : > { %v386_v0 = vadd.f32 %v385_v59, %v349_v53  ;;  %v327_v53 = vsub.f32 %v253_v46, %v290_v47  ;;  %v363_v59 = vmul.f32 %v326_v48, %v326_v48  ;;  %v298_v23 = vld [vmem:[%s971_s7 + $0x100] sm:$0xff]  ;;  %v262_v27 = vld [vmem:[%s964_s28 + $0x108] sm:$0xff]  ;;  %v299_v28 = vld [vmem:[%s971_s7 + $0x108] sm:$0xff] }
  0x6b   : > { %v263_v32 = vld [vmem:[%s964_s28 + $0x110] sm:$0xff]  ;;  %v300_v33 = vld [vmem:[%s971_s7 + $0x110] sm:$0xff]  ;;  %v264_v37 = vld [vmem:[%s964_s28 + $0x118] sm:$0xff] }
  0x6c   : > { %v387_v5 = vadd.f32 %v386_v0, %v350_v58  ;;  %v328_v58 = vsub.f32 %v254_v51, %v291_v52  ;;  %v364_v0 = vmul.f32 %v327_v53, %v327_v53  ;;  %v301_v38 = vld [vmem:[%s971_s7 + $0x118] sm:$0xff]  ;;  %v265_v42 = vld [vmem:[%s964_s28 + $0x120] sm:$0xff]  ;;  %v302_v43 = vld [vmem:[%s971_s7 + $0x120] sm:$0xff] }
  0x6d   : > { %v339_v47 = vsub.f32 %v265_v42, %v302_v43 }
  0x6e   : > { %v388_v10 = vadd.f32 %v387_v5, %v351_v63  ;;  %v329_v63 = vsub.f32 %v255_v56, %v292_v57  ;;  %v365_v5 = vmul.f32 %v328_v58, %v328_v58 }
  0x6f   : > { %v376_v52 = vmul.f32 %v339_v47, %v339_v47 }
  0x70   : > { %v389_v15 = vadd.f32 %v388_v10, %v352_v4  ;;  %v330_v4 = vsub.f32 %v256_v61, %v293_v62  ;;  %v366_v10 = vmul.f32 %v329_v63, %v329_v63 }
  0x72   : > { %v390_v20 = vadd.f32 %v389_v15, %v353_v9  ;;  %v331_v9 = vsub.f32 %v257_v2, %v294_v3  ;;  %v367_v15 = vmul.f32 %v330_v4, %v330_v4 }
  0x74   : > { %v391_v25 = vadd.f32 %v390_v20, %v354_v14  ;;  %v332_v14 = vsub.f32 %v258_v7, %v295_v8  ;;  %v368_v20 = vmul.f32 %v331_v9, %v331_v9 }
  0x76   : > { %v392_v30 = vadd.f32 %v391_v25, %v355_v19  ;;  %v333_v19 = vsub.f32 %v259_v12, %v296_v13  ;;  %v369_v25 = vmul.f32 %v332_v14, %v332_v14 }
  0x78   : > { %v393_v35 = vadd.f32 %v392_v30, %v356_v24  ;;  %v334_v24 = vsub.f32 %v260_v17, %v297_v18  ;;  %v370_v30 = vmul.f32 %v333_v19, %v333_v19 }
  0x7a   : > { %v394_v40 = vadd.f32 %v393_v35, %v357_v29  ;;  %v335_v29 = vsub.f32 %v261_v22, %v298_v23  ;;  %v371_v35 = vmul.f32 %v334_v24, %v334_v24 }
  0x7c   : > { %v395_v45 = vadd.f32 %v394_v40, %v358_v34  ;;  %v336_v34 = vsub.f32 %v262_v27, %v299_v28  ;;  %v372_v40 = vmul.f32 %v335_v29, %v335_v29 }
  0x7e   : > { %v396_v50 = vadd.f32 %v395_v45, %v359_v39  ;;  %v337_v39 = vsub.f32 %v263_v32, %v300_v33  ;;  %v373_v45 = vmul.f32 %v336_v34, %v336_v34 }
  0x80   : > { %v397_v55 = vadd.f32 %v396_v50, %v360_v44  ;;  %v338_v44 = vsub.f32 %v264_v37, %v301_v38  ;;  %v374_v48 = vmul.f32 %v337_v39, %v337_v39 }
  0x82   : > { %v398_v60 = vadd.f32 %v397_v55, %v361_v49  ;;  %v375_v50 = vmul.f32 %v338_v44, %v338_v44 }
  0x84   : > { %v399_v1 = vadd.f32 %v398_v60, %v362_v54 }
  0x86   : > { %v400_v6 = vadd.f32 %v399_v1, %v363_v59 }
  0x88   : > { %v401_v11 = vadd.f32 %v400_v6, %v364_v0 }
  0x8a   : > { %v402_v16 = vadd.f32 %v401_v11, %v365_v5 }
  0x8c   : > { %v403_v21 = vadd.f32 %v402_v16, %v366_v10 }
  0x8e   : > { %v404_v26 = vadd.f32 %v403_v21, %v367_v15 }
  0x90   : > { %v405_v31 = vadd.f32 %v404_v26, %v368_v20 }
  0x92   : > { %v406_v36 = vadd.f32 %v405_v31, %v369_v25 }
  0x94   : > { %v407_v41 = vadd.f32 %v406_v36, %v370_v30 }
  0x96   : > { %v408_v46 = vadd.f32 %v407_v41, %v371_v35 }
  0x98   : > { %v409_v49 = vadd.f32 %v408_v46, %v372_v40 }
  0x9a   : > { %v410_v51 = vadd.f32 %v409_v49, %v373_v45 }
  0x9c   : > { %v411_v53 = vadd.f32 %v410_v51, %v374_v48 }
  0x9e   : > { %v412_v54 = vadd.f32 %v411_v53, %v375_v50 }
  0xa0   : > { %v413_v55 = vadd.f32 %v412_v54, %v376_v52 }
  0xa2   : > { %415 = vst [vmem:[%s221_s18] sm:$0xff] %v413_v55 }
  0xa3   : > { %697 = shalt.err (!%p694_p11)
}
  0xa4   : > { %s698_s27 = scalar_lea.hbm %s1056_s4, 128  ;;  %s702_s30 = scalar_lea.hbm %s1107_s2, 256 }
  0xa5   : > { %p699_p1 = scmp.ne.s32.totalorder %s1056_s4, %s698_s27  ;;  %p703_p4 = scmp.lt.u32.totalorder %s1056_s4, %s1107_s2 }
  0xa6   : > { %p704_p6 = scmp.lt.u32.totalorder %s702_s30, %s698_s27  ;;  %p706_p0 = scmp.lt.u32.totalorder %s698_s27, %s1056_s4 }
  0xa7   : > { %p700_p5 = pnand %p699_p1, %p1118_p3 }
  0xa8   : > { %p705_p8 = por %p704_p6, %p703_p4 }
  0xa9   : > { %p701_p2 = pneg %p700_p5 }
  0xaa   : > { %p707_p12 = por %p706_p0, %p705_p8 }
  0xac   : > { %p708_p13 = pnand %p707_p12, %p701_p2 }
  0xae   : > { %711 = shalt.err (!%p708_p13)
}
  0xaf   : > { %558 = dma.vmem_to_hbm [thread:$0]  (%p1118_p3), %s1058_s19, 128, %s1056_s4, %s417_s15  }
  0xb0 PF: > { %s442_s7 = sand.u32 1, %s750_s9   ;;  %p1119_p7 = scmp.ne.s32.totalorder %s1113_s24, 0 }
  0xb1   : > { %p1120_p10 = scmp.ge.s32.totalorder %s770_s14, 2  ;;  %s443_s21 = scalar_lea.sflag [#allocation4], %s442_s7 }
  0xb3   : > { %p568_p9 = pnand %p1120_p10, %p1119_p7 }
  0xb5   : > { %745 = dma.done.wait (!%p568_p9), %s443_s21, 128  }
  0xb6   : > { %747 = vsyncadd (!%p568_p9), %s443_s21, 4294967168  ;;  %s21_s14 = sadd.s32 1, %s770_s14   ;;  %s1121_s9 = smov %s754_s10 }
  0xb7   : > { %p18_p11 = scmp.ge.s32.totalorder %s21_s14, 4   ;;  %s1122_s10 = smov %s758_s11 }
  0xb8   : > { %s1123_s11 = smov %s848_s23  ;;  %s1124_s12 = smov %s766_s13 }
  0xb9   : > { %s1125_s13 = smov %s1127_s17  ;;  %20 = sbr.rel (!%p18_p11) target bundleno = 8 (0x8), region = 90 }
  0xc0   :  { %448 = vsyncpa [#allocation3], 1 }
  0xc1   :  { %450 = vsyncpa [#allocation3 + $0x1], 1 }
  0xc2   :  { %451 = vsyncpa [#allocation6], 1 }
  0xc3   :  { %453 = vsyncpa [#allocation6 + $0x1], 1 }
  0xc4   :  { %454 = vsyncpa [#allocation4], 1 }
  0xc5   :  { %456 = vsyncpa [#allocation4 + $0x1], 1 }

</bundles_post_ra>
